<compile_context>
chip_gen: v7x
topology: tpu7x:2x2x1
jax: 0.10.0
libtpu: 0.0.40
codegen_flags: <defaults>
</compile_context>

<pallas_src>
import functools

import jax
import jax.numpy as jnp
from jax.experimental import pallas as pl
from jax.experimental.pallas import tpu as pltpu


def _scale_transpose_kernel(x_ref, scale_ref, o_ref, *, chan_axis, n_slabs):
    # x_ref:     (1, HW, tc)       channels-last slab (lane dim = channels)
    # scale_ref: (n_slabs, tc)     full scale, resident across all grid steps
    # o_ref:     (1, tc, HW)       channels-first slab (lane dim = HW)
    x = x_ref[0]                                     # (HW, tc)
    k = 0 if n_slabs == 1 else pl.program_id(chan_axis)
    s = scale_ref[pl.ds(k, 1), :]                    # (1, tc) slab of the scale
    y = x * s                                        # per-lane VPU multiply
    o_ref[0] = y.T                                   # 2D XLU transpose


def _pick_tc(C):
    """Two channel slabs on 2-TensorCore chips (v7x), one full-C slab otherwise."""
    two_tc = False
    try:
        kind = jax.devices()[0].device_kind.lower()
        two_tc = "v7" in kind
    except Exception:
        two_tc = False
    if two_tc and C % 2 == 0 and (C // 2) % 128 == 0:
        return C // 2
    return C


def layer_scale_permute(x_nhwc, layer_scale, *, tc=None):
    """x_nhwc: (N, H, W, C) f32; layer_scale: (C,1,1) or (C,) f32 -> (N, C, H, W)."""
    N, H, W, C = x_nhwc.shape
    HW = H * W
    if tc is None:
        tc = _pick_tc(C)
    if C % tc != 0 or (tc != C and tc % 128 != 0):
        tc = C  # single full-extent slab (always legal w.r.t. the 128-lane rule)
    n_slabs = C // tc

    scale_2d = layer_scale.reshape(n_slabs, tc)
    x3d = x_nhwc.reshape(N, HW, C)

    if N == 1:
        # Drop the degenerate batch axis from the grid: fewer steps, same result.
        grid = (n_slabs,)
        chan_axis = 0
        x_spec = pl.BlockSpec((1, HW, tc), lambda k: (0, 0, k))
        s_spec = pl.BlockSpec((n_slabs, tc), lambda k: (0, 0))
        o_spec = pl.BlockSpec((1, tc, HW), lambda k: (0, k, 0))
        dims = ("parallel",)
    else:
        grid = (N, n_slabs)
        chan_axis = 1
        x_spec = pl.BlockSpec((1, HW, tc), lambda n, k: (n, 0, k))
        s_spec = pl.BlockSpec((n_slabs, tc), lambda n, k: (0, 0))
        o_spec = pl.BlockSpec((1, tc, HW), lambda n, k: (n, k, 0))
        dims = ("parallel", "parallel")

    kernel = functools.partial(
        _scale_transpose_kernel, chan_axis=chan_axis, n_slabs=n_slabs
    )

    out3d = pl.pallas_call(
        kernel,
        out_shape=jax.ShapeDtypeStruct((N, C, HW), x_nhwc.dtype),
        grid=grid,
        in_specs=[x_spec, s_spec],
        out_specs=o_spec,
        compiler_params=pltpu.CompilerParams(dimension_semantics=dims),
        cost_estimate=pl.CostEstimate(
            flops=N * HW * C,                       # one multiply per element
            transcendentals=0,
            bytes_accessed=2 * N * HW * C * 4 + C * 4,
        ),
    )(x3d, scale_2d)

    # Metadata-only reshape to NCHW.
    return out3d.reshape(N, C, H, W)


if __name__ == "__main__":
    key = jax.random.PRNGKey(0)
    kx, ks = jax.random.split(key)

    # Shapes from the module: x102 = [1, 14, 14, 768], layer_scale7 = [768, 1, 1]
    N, H, W, C = 1, 14, 14, 768
    x102 = jax.random.normal(kx, (N, H, W, C), dtype=jnp.float32)
    layer_scale7 = jax.random.uniform(ks, (C, 1, 1), dtype=jnp.float32)

    # Reference (plain JAX): permute then broadcast-mul, exactly as the module.
    ref = layer_scale7[None, :, 0, 0, None, None] * jnp.transpose(x102, (0, 3, 1, 2))

    # Default path: per-chip slab choice (full-C on v5e/v6e, two slabs on v7x).
    out = jax.block_until_ready(layer_scale_permute(x102, layer_scale7))
    assert out.shape == (N, C, H, W)
    assert jnp.allclose(out, ref, atol=1e-6, rtol=1e-6)

    # Also exercise the 2-slab (v7x-style) path explicitly for correctness.
    out2 = jax.block_until_ready(layer_scale_permute(x102, layer_scale7, tc=C // 2))
    assert jnp.allclose(out2, ref, atol=1e-6, rtol=1e-6)

    print("KERNEL_OK")
</pallas_src>

<mosaic_0001>
module attributes {stable_mosaic.version = 11 : i64} {
  func.func @_scale_transpose_kernel(%arg0: i32, %arg1: memref<1x196x768xf32, #tpu.memory_space<vmem>>, %arg2: memref<1x768xf32, #tpu.memory_space<vmem>>, %arg3: memref<1x768x196xf32, #tpu.memory_space<vmem>>) attributes {dimension_semantics = [#tpu.dimension_semantics<parallel>], iteration_bounds = array<i64: 1>, scalar_prefetch = 0 : i64, scratch_operands = 0 : i64, tpu.core_type = #tpu.core_type<tc>, window_params = [{transform_indices = @transform_0, window_bounds = array<i64: 1, 196, 768>}, {pipeline_mode = #tpu.pipeline_mode<synchronous>, transform_indices = @transform_1, window_bounds = array<i64: 1, 768>}, {transform_indices = @transform_2, window_bounds = array<i64: 1, 768, 196>}]} {
    %c0 = arith.constant 0 : index
    %c0_0 = arith.constant 0 : index
    %c0_1 = arith.constant 0 : index
    %0 = vector.load %arg1[%c0, %c0_0, %c0_1] : memref<1x196x768xf32, #tpu.memory_space<vmem>>, vector<1x196x768xf32>
    %1 = vector.shape_cast %0 : vector<1x196x768xf32> to vector<196x768xf32>
    %c0_2 = arith.constant 0 : index
    %c0_3 = arith.constant 0 : index
    %2 = vector.load %arg2[%c0_2, %c0_3] : memref<1x768xf32, #tpu.memory_space<vmem>>, vector<1x768xf32>
    %3 = vector.broadcast %2 : vector<1x768xf32> to vector<196x768xf32>
    %4 = arith.mulf %1, %3 : vector<196x768xf32>
    %5 = tpu.transpose %4, [1, 0] : vector<196x768xf32> -> vector<768x196xf32>
    %c0_4 = arith.constant 0 : index
    %c0_5 = arith.constant 0 : index
    %c0_6 = arith.constant 0 : index
    %6 = vector.load %arg3[%c0_4, %c0_5, %c0_6] : memref<1x768x196xf32, #tpu.memory_space<vmem>>, vector<1x768x196xf32>
    %7 = vector.shape_cast %6 : vector<1x768x196xf32> to vector<768x196xf32>
    %8 = vector.shape_cast %5 : vector<768x196xf32> to vector<1x768x196xf32>
    tpu.vector_store %arg3[%c0_4, %c0_5, %c0_6], %8 {strides = array<i32>} : memref<1x768x196xf32, #tpu.memory_space<vmem>>, vector<1x768x196xf32>,
    return
  }
  func.func @transform_0(%arg0: i32) -> (i32, i32, i32) {
    %c0_i32 = arith.constant 0 : i32
    %c0_i32_0 = arith.constant 0 : i32
    %c0_i32_1 = arith.constant 0 : i32
    return %c0_i32, %c0_i32_0, %arg0 : i32, i32, i32
  }
  func.func @transform_1(%arg0: i32) -> (i32, i32) {
    %c0_i32 = arith.constant 0 : i32
    %c0_i32_0 = arith.constant 0 : i32
    %c0_i32_1 = arith.constant 0 : i32
    return %c0_i32, %c0_i32_0 : i32, i32
  }
  func.func @transform_2(%arg0: i32) -> (i32, i32, i32) {
    %c0_i32 = arith.constant 0 : i32
    %c0_i32_0 = arith.constant 0 : i32
    %c0_i32_1 = arith.constant 0 : i32
    return %c0_i32, %arg0, %c0_i32_0 : i32, i32, i32
  }
}

</mosaic_0001>

<bundles_post_ra>
// kernel: tpu_custom_call.1
= control target key start
LH: loop header
LB: loop body
LE: loop exit
PB: predicated region body
PF: predicated region fallthrough
CT: control target
= control target key end

     0   :  { %v163_v0 = vlaneseq  ;;  %vm728_vm0 = vcmask 556032   ;;  %s2227_s1 = inlined_call_operand.vmem [shape: f32[1,768], index: 1, kind: input, shape index: {}]   ;;  %s2228_s0 = inlined_call_operand.vmem [shape: f32[1,196,768], index: 0, kind: input, shape index: {}]   ;;  %s2229_s2 = inlined_call_operand.vmem [shape: f32[1,768,196], index: 2, kind: output, shape index: {}]  }
   0x1   :  { %v161_v2 = vld [vmem:[%s2227_s1] sm:$0x3f]  ;;  %v12_v6 = vld [vmem:[%s2228_s0 + $0x8] sm:$0xff]  ;;  %v18_v14 = vld [vmem:[%s2228_s0 + $0x38] sm:$0xff] }
   0x2   :  { %v164_v1 = vshrl.u32 %v163_v0, 7  ;;  %v11_v7 = vld [vmem:[%s2228_s0] sm:$0xff]  ;;  %v17_v15 = vld [vmem:[%s2228_s0 + $0x30] sm:$0xff]  ;;  %v24_v23 = vld [vmem:[%s2228_s0 + $0x68] sm:$0xff] }
   0x3   :  { %v23_v24 = vld [vmem:[%s2228_s0 + $0x60] sm:$0xff]  ;;  %v30_v27 = vld [vmem:[%s2228_s0 + $0x98] sm:$0xff]  ;;  %v29_v28 = vld [vmem:[%s2228_s0 + $0x90] sm:$0xff] }
   0x4   :  { %v169_v3 = vsub.s32 1, %v164_v1  ;;  %v165_v4 = vsub.s32 0, %v164_v1  ;;  %v177_v5 = vsub.s32 3, %v164_v1  ;;  %v173_v8 = vsub.s32 2, %v164_v1  ;;  %v36_v31 = vld [vmem:[%s2228_s0 + $0xc8] sm:$0xff]  ;;  %v35_v32 = vld [vmem:[%s2228_s0 + $0xc0] sm:$0xff] }
   0x5   :  { %v185_v9 = vsub.s32 5, %v164_v1  ;;  %v181_v10 = vsub.s32 4, %v164_v1  ;;  %v42_v35 = vld [vmem:[%s2228_s0 + $0xf8] sm:$0xff]  ;;  %v41_v36 = vld [vmem:[%s2228_s0 + $0xf0] sm:$0xff]  ;;  %v48_v39 = vld [vmem:[%s2228_s0 + $0x128] sm:$0xff] }
   0x6   :  { %v949_v11 = vrot.slane %v161_v2, %v169_v3  ;;  %v951_v12 = vrot.slane %v161_v2, %v165_v4  ;;  %v953_v13 = vrot.slane %v161_v2, %v177_v5  ;;  %v961_v16 = vrot.slane %v161_v2, %v173_v8  ;;  %v47_v40 = vld [vmem:[%s2228_s0 + $0x120] sm:$0xff]  ;;  %v54_v43 = vld [vmem:[%s2228_s0 + $0x158] sm:$0xff]  ;;  %v53_v44 = vld [vmem:[%s2228_s0 + $0x150] sm:$0xff] }
   0x7   :  { %v963_v17 = vrot.slane %v161_v2, %v185_v9  ;;  %v965_v18 = vrot.slane %v161_v2, %v181_v10  ;;  %v60_v47 = vld [vmem:[%s2228_s0 + $0x188] sm:$0xff]  ;;  %v59_v48 = vld [vmem:[%s2228_s0 + $0x180] sm:$0xff]  ;;  %v66_v51 = vld [vmem:[%s2228_s0 + $0x1b8] sm:$0xff] }
   0x8   :  { %v194_v19 = vmul.f32 %v949_v11, %v12_v6  ;;  %v193_v20 = vmul.f32 %v951_v12, %v11_v7  ;;  %v200_v21 = vmul.f32 %v949_v11, %v18_v14  ;;  %v199_v22 = vmul.f32 %v951_v12, %v17_v15  ;;  %v65_v52 = vld [vmem:[%s2228_s0 + $0x1b0] sm:$0xff]  ;;  %v72_v55 = vld [vmem:[%s2228_s0 + $0x1e8] sm:$0xff]  ;;  %v71_v56 = vld [vmem:[%s2228_s0 + $0x1e0] sm:$0xff] }
   0x9   :  { %v206_v25 = vmul.f32 %v949_v11, %v24_v23  ;;  %v205_v26 = vmul.f32 %v951_v12, %v23_v24  ;;  %v212_v29 = vmul.f32 %v949_v11, %v30_v27  ;;  %v211_v30 = vmul.f32 %v951_v12, %v29_v28  ;;  %v78_v59 = vld [vmem:[%s2228_s0 + $0x218] sm:$0xff]  ;;  %v77_v60 = vld [vmem:[%s2228_s0 + $0x210] sm:$0xff]  ;;  %v84_v63 = vld [vmem:[%s2228_s0 + $0x248] sm:$0xff] }
   0xa   :  { %375 = vxpose.xlu1.b32.start [1/16] %v194_v19, 128  ;;  %343 = vxpose.xlu0.b32.start [1/16] %v193_v20, 128  ;;  %v218_v33 = vmul.f32 %v949_v11, %v36_v31  ;;  %v217_v34 = vmul.f32 %v951_v12, %v35_v32  ;;  %v224_v37 = vmul.f32 %v949_v11, %v42_v35  ;;  %v83_v0 = vld [vmem:[%s2228_s0 + $0x240] sm:$0xff]  ;;  %v90_v3 = vld [vmem:[%s2228_s0 + $0x278] sm:$0xff]  ;;  %v89_v4 = vld [vmem:[%s2228_s0 + $0x270] sm:$0xff] }
   0xb   :  { %v223_v38 = vmul.f32 %v951_v12, %v41_v36  ;;  %v230_v41 = vmul.f32 %v949_v11, %v48_v39  ;;  %v229_v42 = vmul.f32 %v951_v12, %v47_v40  ;;  %v236_v45 = vmul.f32 %v949_v11, %v54_v43  ;;  %v96_v7 = vld [vmem:[%s2228_s0 + $0x2a8] sm:$0xff]  ;;  %v95_v8 = vld [vmem:[%s2228_s0 + $0x2a0] sm:$0xff]  ;;  %v102_v14 = vld [vmem:[%s2228_s0 + $0x2d8] sm:$0xff] }
   0xc   :  { %v235_v46 = vmul.f32 %v951_v12, %v53_v44  ;;  %v242_v49 = vmul.f32 %v949_v11, %v60_v47  ;;  %v241_v50 = vmul.f32 %v951_v12, %v59_v48  ;;  %v248_v53 = vmul.f32 %v949_v11, %v66_v51  ;;  %v101_v15 = vld [vmem:[%s2228_s0 + $0x2d0] sm:$0xff] }
   0xd   :  { %v247_v54 = vmul.f32 %v951_v12, %v65_v52  ;;  %v254_v57 = vmul.f32 %v949_v11, %v72_v55  ;;  %v253_v58 = vmul.f32 %v951_v12, %v71_v56  ;;  %v260_v61 = vmul.f32 %v949_v11, %v78_v59 }
   0xe   :  { %376 = vxpose.xlu1.b32.cont [2/16] %v200_v21, 128  ;;  %344 = vxpose.xlu0.b32.cont [2/16] %v199_v22, 128  ;;  %v259_v62 = vmul.f32 %v951_v12, %v77_v60  ;;  %v266_v1 = vmul.f32 %v949_v11, %v84_v63  ;;  %v265_v2 = vmul.f32 %v951_v12, %v83_v0  ;;  %v14_v21 = vld [vmem:[%s2228_s0 + $0x18] sm:$0xff]  ;;  %v13_v22 = vld [vmem:[%s2228_s0 + $0x10] sm:$0xff] }
   0xf   :  { %v272_v5 = vmul.f32 %v949_v11, %v90_v3  ;;  %v271_v6 = vmul.f32 %v951_v12, %v89_v4  ;;  %v278_v9 = vmul.f32 %v949_v11, %v96_v7  ;;  %v277_v10 = vmul.f32 %v951_v12, %v95_v8 }
  0x10   :  { %v284_v19 = vmul.f32 %v949_v11, %v102_v14  ;;  %v283_v20 = vmul.f32 %v951_v12, %v101_v15  ;;  %v196_v23 = vmul.f32 %v953_v13, %v14_v21  ;;  %v195_v24 = vmul.f32 %v961_v16, %v13_v22 }
  0x12   :  { %377 = vxpose.xlu1.b32.cont [3/16] %v206_v25, 128  ;;  %345 = vxpose.xlu0.b32.cont [3/16] %v205_v26, 128  ;;  %v20_v25 = vld [vmem:[%s2228_s0 + $0x48] sm:$0xff]  ;;  %v19_v26 = vld [vmem:[%s2228_s0 + $0x40] sm:$0xff] }
  0x13   :  { %v202_v27 = vmul.f32 %v953_v13, %v20_v25  ;;  %v201_v28 = vmul.f32 %v961_v16, %v19_v26 }
  0x16   :  { %378 = vxpose.xlu1.b32.cont [4/16] %v212_v29, 128  ;;  %346 = vxpose.xlu0.b32.cont [4/16] %v211_v30, 128  ;;  %v26_v29 = vld [vmem:[%s2228_s0 + $0x78] sm:$0xff]  ;;  %v25_v30 = vld [vmem:[%s2228_s0 + $0x70] sm:$0xff] }
  0x17   :  { %v208_v31 = vmul.f32 %v953_v13, %v26_v29  ;;  %v207_v32 = vmul.f32 %v961_v16, %v25_v30 }
  0x1a   :  { %379 = vxpose.xlu1.b32.cont [5/16] %v218_v33, 128  ;;  %347 = vxpose.xlu0.b32.cont [5/16] %v217_v34, 128  ;;  %v32_v33 = vld [vmem:[%s2228_s0 + $0xa8] sm:$0xff]  ;;  %v31_v34 = vld [vmem:[%s2228_s0 + $0xa0] sm:$0xff] }
  0x1b   :  { %v214_v35 = vmul.f32 %v953_v13, %v32_v33  ;;  %v213_v36 = vmul.f32 %v961_v16, %v31_v34 }
  0x1e   :  { %380 = vxpose.xlu1.b32.cont [6/16] %v224_v37, 128  ;;  %348 = vxpose.xlu0.b32.cont [6/16] %v223_v38, 128  ;;  %v38_v37 = vld [vmem:[%s2228_s0 + $0xd8] sm:$0xff]  ;;  %v37_v38 = vld [vmem:[%s2228_s0 + $0xd0] sm:$0xff] }
  0x1f   :  { %v220_v39 = vmul.f32 %v953_v13, %v38_v37  ;;  %v219_v40 = vmul.f32 %v961_v16, %v37_v38  ;;  %v28_v37 = vld [vmem:[%s2228_s0 + $0x88] sm:$0xff]  ;;  %v27_v38 = vld [vmem:[%s2228_s0 + $0x80] sm:$0xff] }
  0x22   :  { %381 = vxpose.xlu1.b32.cont [7/16] %v230_v41, 128  ;;  %349 = vxpose.xlu0.b32.cont [7/16] %v229_v42, 128  ;;  %v44_v41 = vld [vmem:[%s2228_s0 + $0x108] sm:$0xff]  ;;  %v43_v42 = vld [vmem:[%s2228_s0 + $0x100] sm:$0xff] }
  0x23   :  { %v226_v43 = vmul.f32 %v953_v13, %v44_v41  ;;  %v225_v44 = vmul.f32 %v961_v16, %v43_v42  ;;  %v210_v41 = vmul.f32 %v963_v17, %v28_v37  ;;  %v209_v42 = vmul.f32 %v965_v18, %v27_v38 }
  0x26   :  { %382 = vxpose.xlu1.b32.cont [8/16] %v236_v45, 128  ;;  %350 = vxpose.xlu0.b32.cont [8/16] %v235_v46, 128  ;;  %v50_v45 = vld [vmem:[%s2228_s0 + $0x138] sm:$0xff]  ;;  %v49_v46 = vld [vmem:[%s2228_s0 + $0x130] sm:$0xff] }
  0x27   :  { %v232_v47 = vmul.f32 %v953_v13, %v50_v45  ;;  %v231_v48 = vmul.f32 %v961_v16, %v49_v46 }
  0x2a   :  { %383 = vxpose.xlu1.b32.cont [9/16] %v242_v49, 128  ;;  %351 = vxpose.xlu0.b32.cont [9/16] %v241_v50, 128  ;;  %v56_v49 = vld [vmem:[%s2228_s0 + $0x168] sm:$0xff]  ;;  %v55_v50 = vld [vmem:[%s2228_s0 + $0x160] sm:$0xff] }
  0x2b   :  { %v238_v51 = vmul.f32 %v953_v13, %v56_v49  ;;  %v237_v52 = vmul.f32 %v961_v16, %v55_v50  ;;  %v40_v49 = vld [vmem:[%s2228_s0 + $0xe8] sm:$0xff]  ;;  %v39_v50 = vld [vmem:[%s2228_s0 + $0xe0] sm:$0xff] }
  0x2e   :  { %384 = vxpose.xlu1.b32.cont [10/16] %v248_v53, 128  ;;  %352 = vxpose.xlu0.b32.cont [10/16] %v247_v54, 128  ;;  %v62_v53 = vld [vmem:[%s2228_s0 + $0x198] sm:$0xff]  ;;  %v61_v54 = vld [vmem:[%s2228_s0 + $0x190] sm:$0xff] }
  0x2f   :  { %v244_v55 = vmul.f32 %v953_v13, %v62_v53  ;;  %v243_v56 = vmul.f32 %v961_v16, %v61_v54  ;;  %v222_v53 = vmul.f32 %v963_v17, %v40_v49  ;;  %v221_v54 = vmul.f32 %v965_v18, %v39_v50 }
  0x32   :  { %385 = vxpose.xlu1.b32.cont [11/16] %v254_v57, 128  ;;  %353 = vxpose.xlu0.b32.cont [11/16] %v253_v58, 128  ;;  %v68_v57 = vld [vmem:[%s2228_s0 + $0x1c8] sm:$0xff]  ;;  %v67_v58 = vld [vmem:[%s2228_s0 + $0x1c0] sm:$0xff] }
  0x33   :  { %v250_v59 = vmul.f32 %v953_v13, %v68_v57  ;;  %v249_v60 = vmul.f32 %v961_v16, %v67_v58 }
  0x36   :  { %386 = vxpose.xlu1.b32.cont [12/16] %v260_v61, 128  ;;  %354 = vxpose.xlu0.b32.cont [12/16] %v259_v62, 128  ;;  %v74_v61 = vld [vmem:[%s2228_s0 + $0x1f8] sm:$0xff]  ;;  %v73_v62 = vld [vmem:[%s2228_s0 + $0x1f0] sm:$0xff] }
  0x37   :  { %v256_v63 = vmul.f32 %v953_v13, %v74_v61  ;;  %v255_v0 = vmul.f32 %v961_v16, %v73_v62  ;;  %v52_v61 = vld [vmem:[%s2228_s0 + $0x148] sm:$0xff]  ;;  %v51_v62 = vld [vmem:[%s2228_s0 + $0x140] sm:$0xff] }
  0x3a   :  { %387 = vxpose.xlu1.b32.cont [13/16] %v266_v1, 128  ;;  %355 = vxpose.xlu0.b32.cont [13/16] %v265_v2, 128  ;;  %v80_v1 = vld [vmem:[%s2228_s0 + $0x228] sm:$0xff]  ;;  %v79_v2 = vld [vmem:[%s2228_s0 + $0x220] sm:$0xff] }
  0x3b   :  { %v262_v3 = vmul.f32 %v953_v13, %v80_v1  ;;  %v261_v4 = vmul.f32 %v961_v16, %v79_v2  ;;  %v234_v1 = vmul.f32 %v963_v17, %v52_v61  ;;  %v233_v2 = vmul.f32 %v965_v18, %v51_v62 }
  0x3e   :  { %388 = vxpose.xlu1.b32.cont [14/16] %v272_v5, 128  ;;  %356 = vxpose.xlu0.b32.cont [14/16] %v271_v6, 128  ;;  %v86_v5 = vld [vmem:[%s2228_s0 + $0x258] sm:$0xff]  ;;  %v85_v6 = vld [vmem:[%s2228_s0 + $0x250] sm:$0xff] }
  0x3f   :  { %v268_v7 = vmul.f32 %v953_v13, %v86_v5  ;;  %v267_v8 = vmul.f32 %v961_v16, %v85_v6 }
  0x42   :  { %389 = vxpose.xlu1.b32.cont [15/16] %v278_v9, 128  ;;  %357 = vxpose.xlu0.b32.cont [15/16] %v277_v10, 128  ;;  %v92_v9 = vld [vmem:[%s2228_s0 + $0x288] sm:$0xff]  ;;  %v91_v10 = vld [vmem:[%s2228_s0 + $0x280] sm:$0xff] }
  0x43   :  { %v274_v14 = vmul.f32 %v953_v13, %v92_v9  ;;  %v273_v15 = vmul.f32 %v961_v16, %v91_v10  ;;  %v64_v9 = vld [vmem:[%s2228_s0 + $0x1a8] sm:$0xff]  ;;  %v63_v10 = vld [vmem:[%s2228_s0 + $0x1a0] sm:$0xff] }
  0x46   :  { %390 = vxpose.xlu1.b32.end [16/16] %v284_v19, 128  ;;  %358 = vxpose.xlu0.b32.end [16/16] %v283_v20, 128  ;;  %v98_v19 = vld [vmem:[%s2228_s0 + $0x2b8] sm:$0xff]  ;;  %v97_v20 = vld [vmem:[%s2228_s0 + $0x2b0] sm:$0xff] }
  0x47   :  { %v280_v21 = vmul.f32 %v953_v13, %v98_v19  ;;  %v279_v22 = vmul.f32 %v961_v16, %v97_v20  ;;  %v246_v19 = vmul.f32 %v963_v17, %v64_v9  ;;  %v245_v20 = vmul.f32 %v965_v18, %v63_v10 }
  0x4a   :  { %439 = vxpose.xlu1.b32.start [1/16] %v196_v23, 128  ;;  %407 = vxpose.xlu0.b32.start [1/16] %v195_v24, 128  ;;  %v104_v23 = vld [vmem:[%s2228_s0 + $0x2e8] sm:$0xff]  ;;  %v103_v24 = vld [vmem:[%s2228_s0 + $0x2e0] sm:$0xff] }
  0x4b   :  { %v286_v25 = vmul.f32 %v953_v13, %v104_v23  ;;  %v285_v26 = vmul.f32 %v961_v16, %v103_v24 }
  0x4e   :  { %440 = vxpose.xlu1.b32.cont [2/16] %v202_v27, 128  ;;  %408 = vxpose.xlu0.b32.cont [2/16] %v201_v28, 128  ;;  %v16_v27 = vld [vmem:[%s2228_s0 + $0x28] sm:$0xff]  ;;  %v15_v28 = vld [vmem:[%s2228_s0 + $0x20] sm:$0xff] }
  0x4f   :  { %v198_v29 = vmul.f32 %v963_v17, %v16_v27  ;;  %v197_v30 = vmul.f32 %v965_v18, %v15_v28  ;;  %v76_v27 = vld [vmem:[%s2228_s0 + $0x208] sm:$0xff]  ;;  %v75_v28 = vld [vmem:[%s2228_s0 + $0x200] sm:$0xff] }
  0x52   :  { %441 = vxpose.xlu1.b32.cont [3/16] %v208_v31, 128  ;;  %409 = vxpose.xlu0.b32.cont [3/16] %v207_v32, 128  ;;  %v22_v31 = vld [vmem:[%s2228_s0 + $0x58] sm:$0xff]  ;;  %v21_v32 = vld [vmem:[%s2228_s0 + $0x50] sm:$0xff] }
  0x56   :  { %442 = vxpose.xlu1.b32.cont [4/16] %v214_v35, 128  ;;  %410 = vxpose.xlu0.b32.cont [4/16] %v213_v36, 128  ;;  %v204_v35 = vmul.f32 %v963_v17, %v22_v31  ;;  %v203_v36 = vmul.f32 %v965_v18, %v21_v32  ;;  %v258_v31 = vmul.f32 %v963_v17, %v76_v27 }
  0x57   :  { %v257_v32 = vmul.f32 %v965_v18, %v75_v28 }
  0x5a   :  { %443 = vxpose.xlu1.b32.cont [5/16] %v220_v39, 128  ;;  %411 = vxpose.xlu0.b32.cont [5/16] %v219_v40, 128 }
  0x5e   :  { %444 = vxpose.xlu1.b32.cont [6/16] %v226_v43, 128  ;;  %412 = vxpose.xlu0.b32.cont [6/16] %v225_v44, 128  ;;  %v34_v43 = vld [vmem:[%s2228_s0 + $0xb8] sm:$0xff]  ;;  %v33_v44 = vld [vmem:[%s2228_s0 + $0xb0] sm:$0xff] }
  0x62   :  { %445 = vxpose.xlu1.b32.cont [7/16] %v232_v47, 128  ;;  %413 = vxpose.xlu0.b32.cont [7/16] %v231_v48, 128  ;;  %v216_v47 = vmul.f32 %v963_v17, %v34_v43  ;;  %v215_v48 = vmul.f32 %v965_v18, %v33_v44 }
  0x66   :  { %446 = vxpose.xlu1.b32.cont [8/16] %v238_v51, 128  ;;  %414 = vxpose.xlu0.b32.cont [8/16] %v237_v52, 128 }
  0x6a   :  { %447 = vxpose.xlu1.b32.cont [9/16] %v244_v55, 128  ;;  %415 = vxpose.xlu0.b32.cont [9/16] %v243_v56, 128  ;;  %v46_v55 = vld [vmem:[%s2228_s0 + $0x118] sm:$0xff]  ;;  %v45_v56 = vld [vmem:[%s2228_s0 + $0x110] sm:$0xff] }
  0x6e   :  { %448 = vxpose.xlu1.b32.cont [10/16] %v250_v59, 128  ;;  %416 = vxpose.xlu0.b32.cont [10/16] %v249_v60, 128  ;;  %v228_v59 = vmul.f32 %v963_v17, %v46_v55  ;;  %v227_v60 = vmul.f32 %v965_v18, %v45_v56 }
  0x72   :  { %449 = vxpose.xlu1.b32.cont [11/16] %v256_v63, 128  ;;  %417 = vxpose.xlu0.b32.cont [11/16] %v255_v0, 128 }
  0x76   :  { %450 = vxpose.xlu1.b32.cont [12/16] %v262_v3, 128  ;;  %418 = vxpose.xlu0.b32.cont [12/16] %v261_v4, 128  ;;  %v58_v3 = vld [vmem:[%s2228_s0 + $0x178] sm:$0xff]  ;;  %v57_v4 = vld [vmem:[%s2228_s0 + $0x170] sm:$0xff] }
  0x7a   :  { %451 = vxpose.xlu1.b32.cont [13/16] %v268_v7, 128  ;;  %419 = vxpose.xlu0.b32.cont [13/16] %v267_v8, 128  ;;  %v240_v7 = vmul.f32 %v963_v17, %v58_v3  ;;  %v239_v8 = vmul.f32 %v965_v18, %v57_v4 }
  0x7e   :  { %452 = vxpose.xlu1.b32.cont [14/16] %v274_v14, 128  ;;  %420 = vxpose.xlu0.b32.cont [14/16] %v273_v15, 128 }
  0x82   :  { %453 = vxpose.xlu1.b32.cont [15/16] %v280_v21, 128  ;;  %421 = vxpose.xlu0.b32.cont [15/16] %v279_v22, 128  ;;  %v70_v21 = vld [vmem:[%s2228_s0 + $0x1d8] sm:$0xff]  ;;  %v69_v22 = vld [vmem:[%s2228_s0 + $0x1d0] sm:$0xff] }
  0x86   :  { %454 = vxpose.xlu1.b32.end [16/16] %v286_v25, 128  ;;  %422 = vxpose.xlu0.b32.end [16/16] %v285_v26, 128  ;;  %v252_v25 = vmul.f32 %v963_v17, %v70_v21  ;;  %v251_v26 = vmul.f32 %v965_v18, %v69_v22 }
  0x8a   :  { %503 = vxpose.xlu1.b32.start [1/16] %v198_v29, 128  ;;  %v391_v33 = vpop.trf.xlu1  ;;  %471 = vxpose.xlu0.b32.start [1/16] %v197_v30, 128  ;;  %v359_v34 = vpop.trf.xlu0 }
  0x8b   :  { %760 = vst [vmem:[%s2229_s2 + $0x100] sm:$0xff] %v391_v33  ;;  %727 = vst [vmem:[%s2229_s2] sm:$0xff] %v359_v34  ;;  %v82_v33 = vld [vmem:[%s2228_s0 + $0x238] sm:$0xff]  ;;  %v81_v34 = vld [vmem:[%s2228_s0 + $0x230] sm:$0xff] }
  0x8c   :  { %v264_v37 = vmul.f32 %v963_v17, %v82_v33  ;;  %v263_v38 = vmul.f32 %v965_v18, %v81_v34 }
  0x8e   :  { %504 = vxpose.xlu1.b32.cont [2/16] %v204_v35, 128  ;;  %v392_v39 = vpop.trf.xlu1  ;;  %472 = vxpose.xlu0.b32.cont [2/16] %v203_v36, 128  ;;  %v360_v40 = vpop.trf.xlu0 }
  0x8f   :  { %762 = vst [vmem:[%s2229_s2 + $0x110] sm:$0xff] %v392_v39  ;;  %730 = vst [vmem:[%s2229_s2 + $0x10] sm:$0xff] %v360_v40  ;;  %v88_v39 = vld [vmem:[%s2228_s0 + $0x268] sm:$0xff]  ;;  %v87_v40 = vld [vmem:[%s2228_s0 + $0x260] sm:$0xff] }
  0x90   :  { %v270_v43 = vmul.f32 %v963_v17, %v88_v39  ;;  %v269_v44 = vmul.f32 %v965_v18, %v87_v40 }
  0x92   :  { %505 = vxpose.xlu1.b32.cont [3/16] %v210_v41, 128  ;;  %v393_v45 = vpop.trf.xlu1  ;;  %473 = vxpose.xlu0.b32.cont [3/16] %v209_v42, 128  ;;  %v361_v46 = vpop.trf.xlu0 }
  0x93   :  { %764 = vst [vmem:[%s2229_s2 + $0x120] sm:$0xff] %v393_v45  ;;  %732 = vst [vmem:[%s2229_s2 + $0x20] sm:$0xff] %v361_v46  ;;  %v94_v45 = vld [vmem:[%s2228_s0 + $0x298] sm:$0xff]  ;;  %v93_v46 = vld [vmem:[%s2228_s0 + $0x290] sm:$0xff] }
  0x94   :  { %v276_v49 = vmul.f32 %v963_v17, %v94_v45  ;;  %v275_v50 = vmul.f32 %v965_v18, %v93_v46 }
  0x96   :  { %506 = vxpose.xlu1.b32.cont [4/16] %v216_v47, 128  ;;  %v394_v51 = vpop.trf.xlu1  ;;  %474 = vxpose.xlu0.b32.cont [4/16] %v215_v48, 128  ;;  %v362_v52 = vpop.trf.xlu0 }
  0x97   :  { %766 = vst [vmem:[%s2229_s2 + $0x130] sm:$0xff] %v394_v51  ;;  %734 = vst [vmem:[%s2229_s2 + $0x30] sm:$0xff] %v362_v52  ;;  %v100_v51 = vld [vmem:[%s2228_s0 + $0x2c8] sm:$0xff]  ;;  %v99_v52 = vld [vmem:[%s2228_s0 + $0x2c0] sm:$0xff] }
  0x98   :  { %v282_v55 = vmul.f32 %v963_v17, %v100_v51  ;;  %v281_v56 = vmul.f32 %v965_v18, %v99_v52 }
  0x9a   :  { %507 = vxpose.xlu1.b32.cont [5/16] %v222_v53, 128  ;;  %v395_v57 = vpop.trf.xlu1  ;;  %475 = vxpose.xlu0.b32.cont [5/16] %v221_v54, 128  ;;  %v363_v58 = vpop.trf.xlu0 }
  0x9b   :  { %768 = vst [vmem:[%s2229_s2 + $0x140] sm:$0xff] %v395_v57  ;;  %736 = vst [vmem:[%s2229_s2 + $0x40] sm:$0xff] %v363_v58  ;;  %v106_v57 = vld [vmem:[%s2228_s0 + $0x2f8] sm:$0xff]  ;;  %v105_v58 = vld [vmem:[%s2228_s0 + $0x2f0] sm:$0xff] }
  0x9c   :  { %v288_v61 = vmul.f32 %v963_v17, %v106_v57  ;;  %v287_v62 = vmul.f32 %v965_v18, %v105_v58 }
  0x9e   :  { %508 = vxpose.xlu1.b32.cont [6/16] %v228_v59, 128  ;;  %v396_v63 = vpop.trf.xlu1  ;;  %476 = vxpose.xlu0.b32.cont [6/16] %v227_v60, 128  ;;  %v364_v0 = vpop.trf.xlu0 }
  0x9f   :  { %770 = vst [vmem:[%s2229_s2 + $0x150] sm:$0xff] %v396_v63  ;;  %738 = vst [vmem:[%s2229_s2 + $0x50] sm:$0xff] %v364_v0  ;;  %v108_v63 = vld [vmem:[%s2228_s0 + $0x308] sm:$0xff]  ;;  %v107_v0 = vld [vmem:[%s2228_s0 + $0x300] sm:$0xff] }
  0xa0   :  { %v290_v3 = vmul.f32 %v949_v11, %v108_v63  ;;  %v289_v4 = vmul.f32 %v951_v12, %v107_v0 }
  0xa2   :  { %509 = vxpose.xlu1.b32.cont [7/16] %v234_v1, 128  ;;  %v397_v5 = vpop.trf.xlu1  ;;  %477 = vxpose.xlu0.b32.cont [7/16] %v233_v2, 128  ;;  %v365_v6 = vpop.trf.xlu0 }
  0xa3   :  { %772 = vst [vmem:[%s2229_s2 + $0x160] sm:$0xff] %v397_v5  ;;  %740 = vst [vmem:[%s2229_s2 + $0x60] sm:$0xff] %v365_v6  ;;  %v114_v5 = vld [vmem:[%s2228_s0 + $0x338] sm:$0xff]  ;;  %v113_v6 = vld [vmem:[%s2228_s0 + $0x330] sm:$0xff] }
  0xa4   :  { %v296_v9 = vmul.f32 %v949_v11, %v114_v5  ;;  %v295_v10 = vmul.f32 %v951_v12, %v113_v6  ;;  %v110_v5 = vld [vmem:[%s2228_s0 + $0x318] sm:$0xff]  ;;  %v109_v6 = vld [vmem:[%s2228_s0 + $0x310] sm:$0xff] }
  0xa6   :  { %510 = vxpose.xlu1.b32.cont [8/16] %v240_v7, 128  ;;  %v398_v14 = vpop.trf.xlu1  ;;  %478 = vxpose.xlu0.b32.cont [8/16] %v239_v8, 128  ;;  %v366_v15 = vpop.trf.xlu0 }
  0xa7   :  { %774 = vst [vmem:[%s2229_s2 + $0x170] sm:$0xff] %v398_v14  ;;  %742 = vst [vmem:[%s2229_s2 + $0x70] sm:$0xff] %v366_v15  ;;  %v120_v14 = vld [vmem:[%s2228_s0 + $0x368] sm:$0xff]  ;;  %v119_v15 = vld [vmem:[%s2228_s0 + $0x360] sm:$0xff] }
  0xa8   :  { %v302_v21 = vmul.f32 %v949_v11, %v120_v14  ;;  %v301_v22 = vmul.f32 %v951_v12, %v119_v15  ;;  %v116_v14 = vld [vmem:[%s2228_s0 + $0x348] sm:$0xff]  ;;  %v115_v15 = vld [vmem:[%s2228_s0 + $0x340] sm:$0xff] }
  0xaa   :  { %511 = vxpose.xlu1.b32.cont [9/16] %v246_v19, 128  ;;  %v399_v23 = vpop.trf.xlu1  ;;  %479 = vxpose.xlu0.b32.cont [9/16] %v245_v20, 128  ;;  %v367_v24 = vpop.trf.xlu0 }
  0xab   :  { %776 = vst [vmem:[%s2229_s2 + $0x180] sm:$0xff] %v399_v23  ;;  %744 = vst [vmem:[%s2229_s2 + $0x80] sm:$0xff] %v367_v24  ;;  %v126_v23 = vld [vmem:[%s2228_s0 + $0x398] sm:$0xff]  ;;  %v125_v24 = vld [vmem:[%s2228_s0 + $0x390] sm:$0xff] }
  0xac   :  { %v308_v27 = vmul.f32 %v949_v11, %v126_v23  ;;  %v307_v28 = vmul.f32 %v951_v12, %v125_v24  ;;  %v122_v23 = vld [vmem:[%s2228_s0 + $0x378] sm:$0xff]  ;;  %v121_v24 = vld [vmem:[%s2228_s0 + $0x370] sm:$0xff] }
  0xae   :  { %512 = vxpose.xlu1.b32.cont [10/16] %v252_v25, 128  ;;  %v400_v29 = vpop.trf.xlu1  ;;  %480 = vxpose.xlu0.b32.cont [10/16] %v251_v26, 128  ;;  %v368_v30 = vpop.trf.xlu0 }
  0xaf   :  { %778 = vst [vmem:[%s2229_s2 + $0x190] sm:$0xff] %v400_v29  ;;  %746 = vst [vmem:[%s2229_s2 + $0x90] sm:$0xff] %v368_v30  ;;  %v132_v29 = vld [vmem:[%s2228_s0 + $0x3c8] sm:$0xff]  ;;  %v131_v30 = vld [vmem:[%s2228_s0 + $0x3c0] sm:$0xff] }
  0xb0   :  { %v314_v33 = vmul.f32 %v949_v11, %v132_v29  ;;  %v313_v34 = vmul.f32 %v951_v12, %v131_v30  ;;  %v128_v29 = vld [vmem:[%s2228_s0 + $0x3a8] sm:$0xff]  ;;  %v127_v30 = vld [vmem:[%s2228_s0 + $0x3a0] sm:$0xff] }
  0xb2   :  { %513 = vxpose.xlu1.b32.cont [11/16] %v258_v31, 128  ;;  %v401_v35 = vpop.trf.xlu1  ;;  %481 = vxpose.xlu0.b32.cont [11/16] %v257_v32, 128  ;;  %v369_v36 = vpop.trf.xlu0 }
  0xb3   :  { %780 = vst [vmem:[%s2229_s2 + $0x1a0] sm:$0xff] %v401_v35  ;;  %748 = vst [vmem:[%s2229_s2 + $0xa0] sm:$0xff] %v369_v36  ;;  %v138_v35 = vld [vmem:[%s2228_s0 + $0x3f8] sm:$0xff]  ;;  %v137_v36 = vld [vmem:[%s2228_s0 + $0x3f0] sm:$0xff] }
  0xb4   :  { %v320_v39 = vmul.f32 %v949_v11, %v138_v35  ;;  %v319_v40 = vmul.f32 %v951_v12, %v137_v36  ;;  %v134_v35 = vld [vmem:[%s2228_s0 + $0x3d8] sm:$0xff]  ;;  %v133_v36 = vld [vmem:[%s2228_s0 + $0x3d0] sm:$0xff] }
  0xb6   :  { %514 = vxpose.xlu1.b32.cont [12/16] %v264_v37, 128  ;;  %v402_v41 = vpop.trf.xlu1  ;;  %482 = vxpose.xlu0.b32.cont [12/16] %v263_v38, 128  ;;  %v370_v42 = vpop.trf.xlu0 }
  0xb7   :  { %782 = vst [vmem:[%s2229_s2 + $0x1b0] sm:$0xff] %v402_v41  ;;  %750 = vst [vmem:[%s2229_s2 + $0xb0] sm:$0xff] %v370_v42  ;;  %v144_v41 = vld [vmem:[%s2228_s0 + $0x428] sm:$0xff]  ;;  %v143_v42 = vld [vmem:[%s2228_s0 + $0x420] sm:$0xff] }
  0xb8   :  { %v326_v45 = vmul.f32 %v949_v11, %v144_v41  ;;  %v325_v46 = vmul.f32 %v951_v12, %v143_v42  ;;  %v140_v41 = vld [vmem:[%s2228_s0 + $0x408] sm:$0xff]  ;;  %v139_v42 = vld [vmem:[%s2228_s0 + $0x400] sm:$0xff] }
  0xba   :  { %515 = vxpose.xlu1.b32.cont [13/16] %v270_v43, 128  ;;  %v403_v47 = vpop.trf.xlu1  ;;  %483 = vxpose.xlu0.b32.cont [13/16] %v269_v44, 128  ;;  %v371_v48 = vpop.trf.xlu0 }
  0xbb   :  { %784 = vst [vmem:[%s2229_s2 + $0x1c0] sm:$0xff] %v403_v47  ;;  %752 = vst [vmem:[%s2229_s2 + $0xc0] sm:$0xff] %v371_v48  ;;  %v150_v47 = vld [vmem:[%s2228_s0 + $0x458] sm:$0xff]  ;;  %v149_v48 = vld [vmem:[%s2228_s0 + $0x450] sm:$0xff] }
  0xbc   :  { %v332_v51 = vmul.f32 %v949_v11, %v150_v47  ;;  %v331_v52 = vmul.f32 %v951_v12, %v149_v48  ;;  %v146_v47 = vld [vmem:[%s2228_s0 + $0x438] sm:$0xff]  ;;  %v145_v48 = vld [vmem:[%s2228_s0 + $0x430] sm:$0xff] }
  0xbe   :  { %516 = vxpose.xlu1.b32.cont [14/16] %v276_v49, 128  ;;  %v404_v53 = vpop.trf.xlu1  ;;  %484 = vxpose.xlu0.b32.cont [14/16] %v275_v50, 128  ;;  %v372_v54 = vpop.trf.xlu0 }
  0xbf   :  { %786 = vst [vmem:[%s2229_s2 + $0x1d0] sm:$0xff] %v404_v53  ;;  %754 = vst [vmem:[%s2229_s2 + $0xd0] sm:$0xff] %v372_v54  ;;  %v156_v53 = vld [vmem:[%s2228_s0 + $0x488] sm:$0xf]  ;;  %v155_v54 = vld [vmem:[%s2228_s0 + $0x480] sm:$0xf] }
  0xc0   :  { %v338_v57 = vmul.f32 %v949_v11, %v156_v53  ;;  %v337_v58 = vmul.f32 %v951_v12, %v155_v54  ;;  %v152_v53 = vld [vmem:[%s2228_s0 + $0x468] sm:$0xff]  ;;  %v151_v54 = vld [vmem:[%s2228_s0 + $0x460] sm:$0xff] }
  0xc2   :  { %517 = vxpose.xlu1.b32.cont [15/16] %v282_v55, 128  ;;  %v405_v59 = vpop.trf.xlu1  ;;  %485 = vxpose.xlu0.b32.cont [15/16] %v281_v56, 128  ;;  %v373_v60 = vpop.trf.xlu0 }
  0xc3   :  { %788 = vst [vmem:[%s2229_s2 + $0x1e0] sm:$0xff] %v405_v59  ;;  %756 = vst [vmem:[%s2229_s2 + $0xe0] sm:$0xff] %v373_v60 }
  0xc6   :  { %518 = vxpose.xlu1.b32.end [16/16] %v288_v61, 128  ;;  %v406_v1 = vpop.trf.xlu1  ;;  %486 = vxpose.xlu0.b32.end [16/16] %v287_v62, 128  ;;  %v374_v2 = vpop.trf.xlu0 }
  0xc7   :  { %790 = vst [vmem:[%s2229_s2 + $0x1f0] sm:$0xff] %v406_v1  ;;  %758 = vst [vmem:[%s2229_s2 + $0xf0] sm:$0xff] %v374_v2 }
  0xca   :  { %567 = vxpose.xlu1.b32.start [1/9] (short) %v290_v3, 128  ;;  %v455_v7 = vpop.trf.xlu1  ;;  %535 = vxpose.xlu0.b32.start [1/9] (short) %v289_v4, 128  ;;  %v423_v8 = vpop.trf.xlu0 }
  0xcb   :  { %824 = vst [vmem:[%s2229_s2 + $0x300] sm:$0xff] %v455_v7  ;;  %792 = vst [vmem:[%s2229_s2 + $0x200] sm:$0xff] %v423_v8 }
  0xce   :  { %568 = vxpose.xlu1.b32.cont [2/9] (short) %v296_v9, 128  ;;  %v456_v19 = vpop.trf.xlu1  ;;  %536 = vxpose.xlu0.b32.cont [2/9] (short) %v295_v10, 128  ;;  %v424_v20 = vpop.trf.xlu0  ;;  %v292_v9 = vmul.f32 %v953_v13, %v110_v5  ;;  %v291_v10 = vmul.f32 %v961_v16, %v109_v6 }
  0xcf   :  { %826 = vst [vmem:[%s2229_s2 + $0x310] sm:$0xff] %v456_v19  ;;  %794 = vst [vmem:[%s2229_s2 + $0x210] sm:$0xff] %v424_v20 }
  0xd2   :  { %569 = vxpose.xlu1.b32.cont [3/9] (short) %v302_v21, 128  ;;  %v457_v25 = vpop.trf.xlu1  ;;  %537 = vxpose.xlu0.b32.cont [3/9] (short) %v301_v22, 128  ;;  %v425_v26 = vpop.trf.xlu0  ;;  %v298_v21 = vmul.f32 %v953_v13, %v116_v14  ;;  %v297_v22 = vmul.f32 %v961_v16, %v115_v15 }
  0xd3   :  { %828 = vst [vmem:[%s2229_s2 + $0x320] sm:$0xff] %v457_v25  ;;  %796 = vst [vmem:[%s2229_s2 + $0x220] sm:$0xff] %v425_v26 }
  0xd6   :  { %570 = vxpose.xlu1.b32.cont [4/9] (short) %v308_v27, 128  ;;  %v458_v31 = vpop.trf.xlu1  ;;  %538 = vxpose.xlu0.b32.cont [4/9] (short) %v307_v28, 128  ;;  %v426_v32 = vpop.trf.xlu0  ;;  %v304_v27 = vmul.f32 %v953_v13, %v122_v23  ;;  %v303_v28 = vmul.f32 %v961_v16, %v121_v24 }
  0xd7   :  { %830 = vst [vmem:[%s2229_s2 + $0x330] sm:$0xff] %v458_v31  ;;  %798 = vst [vmem:[%s2229_s2 + $0x230] sm:$0xff] %v426_v32 }
  0xda   :  { %571 = vxpose.xlu1.b32.cont [5/9] (short) %v314_v33, 128  ;;  %v459_v37 = vpop.trf.xlu1  ;;  %539 = vxpose.xlu0.b32.cont [5/9] (short) %v313_v34, 128  ;;  %v427_v38 = vpop.trf.xlu0  ;;  %v310_v33 = vmul.f32 %v953_v13, %v128_v29  ;;  %v309_v34 = vmul.f32 %v961_v16, %v127_v30 }
  0xdb   :  { %832 = vst [vmem:[%s2229_s2 + $0x340] sm:$0xff] %v459_v37  ;;  %800 = vst [vmem:[%s2229_s2 + $0x240] sm:$0xff] %v427_v38 }
  0xde   :  { %572 = vxpose.xlu1.b32.cont [6/9] (short) %v320_v39, 128  ;;  %v460_v43 = vpop.trf.xlu1  ;;  %540 = vxpose.xlu0.b32.cont [6/9] (short) %v319_v40, 128  ;;  %v428_v44 = vpop.trf.xlu0  ;;  %v316_v39 = vmul.f32 %v953_v13, %v134_v35  ;;  %v315_v40 = vmul.f32 %v961_v16, %v133_v36 }
  0xdf   :  { %834 = vst [vmem:[%s2229_s2 + $0x350] sm:$0xff] %v460_v43  ;;  %802 = vst [vmem:[%s2229_s2 + $0x250] sm:$0xff] %v428_v44 }
  0xe2   :  { %573 = vxpose.xlu1.b32.cont [7/9] (short) %v326_v45, 128  ;;  %v461_v49 = vpop.trf.xlu1  ;;  %541 = vxpose.xlu0.b32.cont [7/9] (short) %v325_v46, 128  ;;  %v429_v50 = vpop.trf.xlu0  ;;  %v322_v45 = vmul.f32 %v953_v13, %v140_v41  ;;  %v321_v46 = vmul.f32 %v961_v16, %v139_v42 }
  0xe3   :  { %836 = vst [vmem:[%s2229_s2 + $0x360] sm:$0xff] %v461_v49  ;;  %804 = vst [vmem:[%s2229_s2 + $0x260] sm:$0xff] %v429_v50 }
  0xe6   :  { %574 = vxpose.xlu1.b32.cont [8/9] (short) %v332_v51, 128  ;;  %v462_v55 = vpop.trf.xlu1  ;;  %542 = vxpose.xlu0.b32.cont [8/9] (short) %v331_v52, 128  ;;  %v430_v56 = vpop.trf.xlu0  ;;  %v328_v51 = vmul.f32 %v953_v13, %v146_v47  ;;  %v327_v52 = vmul.f32 %v961_v16, %v145_v48 }
  0xe7   :  { %838 = vst [vmem:[%s2229_s2 + $0x370] sm:$0xff] %v462_v55  ;;  %806 = vst [vmem:[%s2229_s2 + $0x270] sm:$0xff] %v430_v56 }
  0xea   :  { %575 = vxpose.xlu1.b32.end [9/9] (short) %v338_v57, 128  ;;  %v463_v59 = vpop.trf.xlu1  ;;  %543 = vxpose.xlu0.b32.end [9/9] (short) %v337_v58, 128  ;;  %v431_v60 = vpop.trf.xlu0  ;;  %v334_v57 = vmul.f32 %v953_v13, %v152_v53  ;;  %v333_v58 = vmul.f32 %v961_v16, %v151_v54 }
  0xeb   :  { %840 = vst [vmem:[%s2229_s2 + $0x380] sm:$0xff] %v463_v59  ;;  %808 = vst [vmem:[%s2229_s2 + $0x280] sm:$0xff] %v431_v60  ;;  %v158_v59 = vld [vmem:[%s2228_s0 + $0x498] sm:$0xf]  ;;  %v157_v60 = vld [vmem:[%s2228_s0 + $0x490] sm:$0xf] }
  0xee   :  { %v464_v11 = vpop.trf.xlu1  ;;  %v432_v12 = vpop.trf.xlu0 }
  0xef   :  { %842 = vst [vmem:[%s2229_s2 + $0x390] sm:$0xff] %v464_v11  ;;  %810 = vst [vmem:[%s2229_s2 + $0x290] sm:$0xff] %v432_v12 }
  0xf2   :  { %v465_v61 = vpop.trf.xlu1  ;;  %v433_v62 = vpop.trf.xlu0 }
  0xf3   :  { %844 = vst [vmem:[%s2229_s2 + $0x3a0] sm:$0xff] %v465_v61  ;;  %812 = vst [vmem:[%s2229_s2 + $0x2a0] sm:$0xff] %v433_v62  ;;  %v340_v61 = vmul.f32 %v953_v13, %v158_v59  ;;  %v339_v62 = vmul.f32 %v961_v16, %v157_v60 }
  0xf6   :  { %v466_v63 = vpop.trf.xlu1  ;;  %v434_v0 = vpop.trf.xlu0 }
  0xf7   :  { %846 = vst [vmem:[%s2229_s2 + $0x3b0] sm:$0xff] %v466_v63  ;;  %814 = vst [vmem:[%s2229_s2 + $0x2b0] sm:$0xff] %v434_v0 }
  0xfa   :  { %v467_v1 = vpop.trf.xlu1  ;;  %v435_v2 = vpop.trf.xlu0 }
  0xfb   :  { %848 = vst [vmem:[%s2229_s2 + $0x3c0] sm:$0xff] %v467_v1  ;;  %816 = vst [vmem:[%s2229_s2 + $0x2c0] sm:$0xff] %v435_v2 }
  0xfe   :  { %v468_v3 = vpop.trf.xlu1  ;;  %v436_v4 = vpop.trf.xlu0 }
  0xff   :  { %850 = vst [vmem:[%s2229_s2 + $0x3d0] sm:$0xff] %v468_v3  ;;  %818 = vst [vmem:[%s2229_s2 + $0x2d0] sm:$0xff] %v436_v4 }
 0x102   :  { %v469_v7 = vpop.trf.xlu1  ;;  %v437_v8 = vpop.trf.xlu0 }
 0x103   :  { %852 = vst [vmem:[%s2229_s2 + $0x3e0] sm:$0xff] %v469_v7  ;;  %820 = vst [vmem:[%s2229_s2 + $0x2e0] sm:$0xff] %v437_v8 }
 0x106   :  { %v470_v19 = vpop.trf.xlu1  ;;  %v438_v20 = vpop.trf.xlu0 }
 0x107   :  { %854 = vst [vmem:[%s2229_s2 + $0x3f0] sm:$0xff] %v470_v19  ;;  %822 = vst [vmem:[%s2229_s2 + $0x2f0] sm:$0xff] %v438_v20  ;;  %631 = vxpose.xlu1.b32.start [1/9] (short) %v292_v9, 128  ;;  %599 = vxpose.xlu0.b32.start [1/9] (short) %v291_v10, 128  ;;  %v112_v9 = vld [vmem:[%s2228_s0 + $0x328] sm:$0xff]  ;;  %v111_v10 = vld [vmem:[%s2228_s0 + $0x320] sm:$0xff] }
 0x108   :  { %v294_v19 = vmul.f32 %v963_v17, %v112_v9  ;;  %v293_v20 = vmul.f32 %v965_v18, %v111_v10 }
 0x10a   :  { %v519_v25 = vpop.trf.xlu1  ;;  %v487_v26 = vpop.trf.xlu0 }
 0x10b   :  { %888 = vst [vmem:[%s2229_s2 + $0x500] sm:$0xff] %v519_v25  ;;  %856 = vst [vmem:[%s2229_s2 + $0x400] sm:$0xff] %v487_v26  ;;  %632 = vxpose.xlu1.b32.cont [2/9] (short) %v298_v21, 128  ;;  %600 = vxpose.xlu0.b32.cont [2/9] (short) %v297_v22, 128  ;;  %v118_v21 = vld [vmem:[%s2228_s0 + $0x358] sm:$0xff]  ;;  %v117_v22 = vld [vmem:[%s2228_s0 + $0x350] sm:$0xff] }
 0x10c   :  { %v300_v25 = vmul.f32 %v963_v17, %v118_v21  ;;  %v299_v26 = vmul.f32 %v965_v18, %v117_v22 }
 0x10e   :  { %v520_v31 = vpop.trf.xlu1  ;;  %v488_v32 = vpop.trf.xlu0 }
 0x10f   :  { %890 = vst [vmem:[%s2229_s2 + $0x510] sm:$0xff] %v520_v31  ;;  %858 = vst [vmem:[%s2229_s2 + $0x410] sm:$0xff] %v488_v32  ;;  %633 = vxpose.xlu1.b32.cont [3/9] (short) %v304_v27, 128  ;;  %601 = vxpose.xlu0.b32.cont [3/9] (short) %v303_v28, 128  ;;  %v124_v27 = vld [vmem:[%s2228_s0 + $0x388] sm:$0xff]  ;;  %v123_v28 = vld [vmem:[%s2228_s0 + $0x380] sm:$0xff] }
 0x110   :  { %v306_v31 = vmul.f32 %v963_v17, %v124_v27  ;;  %v305_v32 = vmul.f32 %v965_v18, %v123_v28 }
 0x112   :  { %v521_v37 = vpop.trf.xlu1  ;;  %v489_v38 = vpop.trf.xlu0 }
 0x113   :  { %892 = vst [vmem:[%s2229_s2 + $0x520] sm:$0xff] %v521_v37  ;;  %860 = vst [vmem:[%s2229_s2 + $0x420] sm:$0xff] %v489_v38  ;;  %634 = vxpose.xlu1.b32.cont [4/9] (short) %v310_v33, 128  ;;  %602 = vxpose.xlu0.b32.cont [4/9] (short) %v309_v34, 128  ;;  %v130_v33 = vld [vmem:[%s2228_s0 + $0x3b8] sm:$0xff]  ;;  %v129_v34 = vld [vmem:[%s2228_s0 + $0x3b0] sm:$0xff] }
 0x114   :  { %v312_v37 = vmul.f32 %v963_v17, %v130_v33  ;;  %v311_v38 = vmul.f32 %v965_v18, %v129_v34 }
 0x116   :  { %v522_v43 = vpop.trf.xlu1  ;;  %v490_v44 = vpop.trf.xlu0 }
 0x117   :  { %894 = vst [vmem:[%s2229_s2 + $0x530] sm:$0xff] %v522_v43  ;;  %862 = vst [vmem:[%s2229_s2 + $0x430] sm:$0xff] %v490_v44  ;;  %635 = vxpose.xlu1.b32.cont [5/9] (short) %v316_v39, 128  ;;  %603 = vxpose.xlu0.b32.cont [5/9] (short) %v315_v40, 128  ;;  %v136_v39 = vld [vmem:[%s2228_s0 + $0x3e8] sm:$0xff]  ;;  %v135_v40 = vld [vmem:[%s2228_s0 + $0x3e0] sm:$0xff] }
 0x118   :  { %v318_v43 = vmul.f32 %v963_v17, %v136_v39  ;;  %v317_v44 = vmul.f32 %v965_v18, %v135_v40 }
 0x11a   :  { %v523_v49 = vpop.trf.xlu1  ;;  %v491_v50 = vpop.trf.xlu0 }
 0x11b   :  { %896 = vst [vmem:[%s2229_s2 + $0x540] sm:$0xff] %v523_v49  ;;  %864 = vst [vmem:[%s2229_s2 + $0x440] sm:$0xff] %v491_v50  ;;  %636 = vxpose.xlu1.b32.cont [6/9] (short) %v322_v45, 128  ;;  %604 = vxpose.xlu0.b32.cont [6/9] (short) %v321_v46, 128  ;;  %v142_v45 = vld [vmem:[%s2228_s0 + $0x418] sm:$0xff]  ;;  %v141_v46 = vld [vmem:[%s2228_s0 + $0x410] sm:$0xff] }
 0x11c   :  { %v324_v49 = vmul.f32 %v963_v17, %v142_v45  ;;  %v323_v50 = vmul.f32 %v965_v18, %v141_v46 }
 0x11e   :  { %v524_v55 = vpop.trf.xlu1  ;;  %v492_v56 = vpop.trf.xlu0 }
 0x11f   :  { %898 = vst [vmem:[%s2229_s2 + $0x550] sm:$0xff] %v524_v55  ;;  %866 = vst [vmem:[%s2229_s2 + $0x450] sm:$0xff] %v492_v56  ;;  %637 = vxpose.xlu1.b32.cont [7/9] (short) %v328_v51, 128  ;;  %605 = vxpose.xlu0.b32.cont [7/9] (short) %v327_v52, 128  ;;  %v148_v51 = vld [vmem:[%s2228_s0 + $0x448] sm:$0xff]  ;;  %v147_v52 = vld [vmem:[%s2228_s0 + $0x440] sm:$0xff] }
 0x120   :  { %v330_v55 = vmul.f32 %v963_v17, %v148_v51  ;;  %v329_v56 = vmul.f32 %v965_v18, %v147_v52 }
 0x122   :  { %v525_v11 = vpop.trf.xlu1  ;;  %v493_v12 = vpop.trf.xlu0 }
 0x123   :  { %900 = vst [vmem:[%s2229_s2 + $0x560] sm:$0xff] %v525_v11  ;;  %868 = vst [vmem:[%s2229_s2 + $0x460] sm:$0xff] %v493_v12  ;;  %638 = vxpose.xlu1.b32.cont [8/9] (short) %v334_v57, 128  ;;  %606 = vxpose.xlu0.b32.cont [8/9] (short) %v333_v58, 128  ;;  %v154_v57 = vld [vmem:[%s2228_s0 + $0x478] sm:$0xff]  ;;  %v153_v58 = vld [vmem:[%s2228_s0 + $0x470] sm:$0xff] }
 0x124   :  { %v336_v11 = vmul.f32 %v963_v17, %v154_v57  ;;  %v335_v12 = vmul.f32 %v965_v18, %v153_v58 }
 0x126   :  { %v526_v63 = vpop.trf.xlu1  ;;  %v494_v0 = vpop.trf.xlu0 }
 0x127   :  { %902 = vst [vmem:[%s2229_s2 + $0x570] sm:$0xff] %v526_v63  ;;  %870 = vst [vmem:[%s2229_s2 + $0x470] sm:$0xff] %v494_v0  ;;  %639 = vxpose.xlu1.b32.end [9/9] (short) %v340_v61, 128  ;;  %607 = vxpose.xlu0.b32.end [9/9] (short) %v339_v62, 128  ;;  %v160_v61 = vld [vmem:[%s2228_s0 + $0x4a8] sm:$0xf]  ;;  %v159_v62 = vld [vmem:[%s2228_s0 + $0x4a0] sm:$0xf] }
 0x12a   :  { %v527_v1 = vpop.trf.xlu1  ;;  %v495_v2 = vpop.trf.xlu0 }
 0x12b   :  { %904 = vst [vmem:[%s2229_s2 + $0x580] sm:$0xff] %v527_v1  ;;  %872 = vst [vmem:[%s2229_s2 + $0x480] sm:$0xff] %v495_v2  ;;  %v342_v1 = vmul.f32 %v963_v17, %v160_v61  ;;  %v341_v2 = vmul.f32 %v965_v18, %v159_v62 }
 0x12e   :  { %v528_v13 = vpop.trf.xlu1  ;;  %v496_v16 = vpop.trf.xlu0 }
 0x12f   :  { %906 = vst [vmem:[%s2229_s2 + $0x590] sm:$0xff] %v528_v13  ;;  %874 = vst [vmem:[%s2229_s2 + $0x490] sm:$0xff] %v496_v16 }
 0x132   :  { %v529_v3 = vpop.trf.xlu1  ;;  %v497_v4 = vpop.trf.xlu0 }
 0x133   :  { %908 = vst [vmem:[%s2229_s2 + $0x5a0] sm:$0xff] %v529_v3  ;;  %876 = vst [vmem:[%s2229_s2 + $0x4a0] sm:$0xff] %v497_v4 }
 0x136   :  { %v530_v5 = vpop.trf.xlu1  ;;  %v498_v6 = vpop.trf.xlu0 }
 0x137   :  { %910 = vst [vmem:[%s2229_s2 + $0x5b0] sm:$0xff] %v530_v5  ;;  %878 = vst [vmem:[%s2229_s2 + $0x4b0] sm:$0xff] %v498_v6 }
 0x13a   :  { %v531_v7 = vpop.trf.xlu1  ;;  %v499_v8 = vpop.trf.xlu0 }
 0x13b   :  { %912 = vst [vmem:[%s2229_s2 + $0x5c0] sm:$0xff] %v531_v7  ;;  %880 = vst [vmem:[%s2229_s2 + $0x4c0] sm:$0xff] %v499_v8 }
 0x13e   :  { %v532_v14 = vpop.trf.xlu1  ;;  %v500_v15 = vpop.trf.xlu0 }
 0x13f   :  { %914 = vst [vmem:[%s2229_s2 + $0x5d0] sm:$0xff] %v532_v14  ;;  %882 = vst [vmem:[%s2229_s2 + $0x4d0] sm:$0xff] %v500_v15 }
 0x142   :  { %v533_v23 = vpop.trf.xlu1  ;;  %v501_v24 = vpop.trf.xlu0 }
 0x143   :  { %916 = vst [vmem:[%s2229_s2 + $0x5e0] sm:$0xff] %v533_v23  ;;  %884 = vst [vmem:[%s2229_s2 + $0x4e0] sm:$0xff] %v501_v24 }
 0x144   :  { %695 = vxpose.xlu1.b32.start [1/9] (short) %v294_v19, 128  ;;  %663 = vxpose.xlu0.b32.start [1/9] (short) %v293_v20, 128 }
 0x146   :  { %v534_v29 = vpop.trf.xlu1  ;;  %v502_v30 = vpop.trf.xlu0 }
 0x147   :  { %918 = vst [vmem:[%s2229_s2 + $0x5f0] sm:$0xff] %v534_v29  ;;  %886 = vst [vmem:[%s2229_s2 + $0x4f0] sm:$0xff] %v502_v30 }
 0x148   :  { %696 = vxpose.xlu1.b32.cont [2/9] (short) %v300_v25, 128  ;;  %664 = vxpose.xlu0.b32.cont [2/9] (short) %v299_v26, 128 }
 0x14a   :  { %v583_v35 = vpop.trf.xlu1  ;;  %v551_v36 = vpop.trf.xlu0 }
 0x14b   :  { %761 = vst.msk [vmem:[%s2229_s2 + $0x108] sm:$0xff] %vm728_vm0, %v583_v35  ;;  %729 = vst.msk [vmem:[%s2229_s2 + $0x8] sm:$0xff] %vm728_vm0, %v551_v36 }
 0x14c   :  { %697 = vxpose.xlu1.b32.cont [3/9] (short) %v306_v31, 128  ;;  %665 = vxpose.xlu0.b32.cont [3/9] (short) %v305_v32, 128 }
 0x14e   :  { %v584_v41 = vpop.trf.xlu1  ;;  %v552_v42 = vpop.trf.xlu0 }
 0x14f   :  { %763 = vst.msk [vmem:[%s2229_s2 + $0x118] sm:$0xff] %vm728_vm0, %v584_v41  ;;  %731 = vst.msk [vmem:[%s2229_s2 + $0x18] sm:$0xff] %vm728_vm0, %v552_v42 }
 0x150   :  { %698 = vxpose.xlu1.b32.cont [4/9] (short) %v312_v37, 128  ;;  %666 = vxpose.xlu0.b32.cont [4/9] (short) %v311_v38, 128 }
 0x152   :  { %v585_v47 = vpop.trf.xlu1  ;;  %v553_v48 = vpop.trf.xlu0 }
 0x153   :  { %765 = vst.msk [vmem:[%s2229_s2 + $0x128] sm:$0xff] %vm728_vm0, %v585_v47  ;;  %733 = vst.msk [vmem:[%s2229_s2 + $0x28] sm:$0xff] %vm728_vm0, %v553_v48 }
 0x154   :  { %699 = vxpose.xlu1.b32.cont [5/9] (short) %v318_v43, 128  ;;  %667 = vxpose.xlu0.b32.cont [5/9] (short) %v317_v44, 128 }
 0x156   :  { %v586_v53 = vpop.trf.xlu1  ;;  %v554_v54 = vpop.trf.xlu0 }
 0x157   :  { %767 = vst.msk [vmem:[%s2229_s2 + $0x138] sm:$0xff] %vm728_vm0, %v586_v53  ;;  %735 = vst.msk [vmem:[%s2229_s2 + $0x38] sm:$0xff] %vm728_vm0, %v554_v54 }
 0x158   :  { %700 = vxpose.xlu1.b32.cont [6/9] (short) %v324_v49, 128  ;;  %668 = vxpose.xlu0.b32.cont [6/9] (short) %v323_v50, 128 }
 0x15a   :  { %v587_v59 = vpop.trf.xlu1  ;;  %v555_v60 = vpop.trf.xlu0 }
 0x15b   :  { %769 = vst.msk [vmem:[%s2229_s2 + $0x148] sm:$0xff] %vm728_vm0, %v587_v59  ;;  %737 = vst.msk [vmem:[%s2229_s2 + $0x48] sm:$0xff] %vm728_vm0, %v555_v60 }
 0x15c   :  { %701 = vxpose.xlu1.b32.cont [7/9] (short) %v330_v55, 128  ;;  %669 = vxpose.xlu0.b32.cont [7/9] (short) %v329_v56, 128 }
 0x15e   :  { %v588_v63 = vpop.trf.xlu1  ;;  %v556_v0 = vpop.trf.xlu0 }
 0x15f   :  { %771 = vst.msk [vmem:[%s2229_s2 + $0x158] sm:$0xff] %vm728_vm0, %v588_v63  ;;  %739 = vst.msk [vmem:[%s2229_s2 + $0x58] sm:$0xff] %vm728_vm0, %v556_v0 }
 0x160   :  { %702 = vxpose.xlu1.b32.cont [8/9] (short) %v336_v11, 128  ;;  %670 = vxpose.xlu0.b32.cont [8/9] (short) %v335_v12, 128 }
 0x162   :  { %v589_v13 = vpop.trf.xlu1  ;;  %v557_v16 = vpop.trf.xlu0 }
 0x163   :  { %773 = vst.msk [vmem:[%s2229_s2 + $0x168] sm:$0xff] %vm728_vm0, %v589_v13  ;;  %741 = vst.msk [vmem:[%s2229_s2 + $0x68] sm:$0xff] %vm728_vm0, %v557_v16 }
 0x164   :  { %703 = vxpose.xlu1.b32.end [9/9] (short) %v342_v1, 128  ;;  %671 = vxpose.xlu0.b32.end [9/9] (short) %v341_v2, 128 }
 0x166   :  { %v590_v3 = vpop.trf.xlu1  ;;  %v558_v4 = vpop.trf.xlu0 }
 0x167   :  { %775 = vst.msk [vmem:[%s2229_s2 + $0x178] sm:$0xff] %vm728_vm0, %v590_v3  ;;  %743 = vst.msk [vmem:[%s2229_s2 + $0x78] sm:$0xff] %vm728_vm0, %v558_v4 }
 0x16a   :  { %v591_v17 = vpop.trf.xlu1  ;;  %v559_v18 = vpop.trf.xlu0 }
 0x16b   :  { %777 = vst.msk [vmem:[%s2229_s2 + $0x188] sm:$0xff] %vm728_vm0, %v591_v17  ;;  %745 = vst.msk [vmem:[%s2229_s2 + $0x88] sm:$0xff] %vm728_vm0, %v559_v18 }
 0x16e   :  { %v592_v5 = vpop.trf.xlu1  ;;  %v560_v6 = vpop.trf.xlu0 }
 0x16f   :  { %779 = vst.msk [vmem:[%s2229_s2 + $0x198] sm:$0xff] %vm728_vm0, %v592_v5  ;;  %747 = vst.msk [vmem:[%s2229_s2 + $0x98] sm:$0xff] %vm728_vm0, %v560_v6 }
 0x172   :  { %v593_v7 = vpop.trf.xlu1  ;;  %v561_v8 = vpop.trf.xlu0 }
 0x173   :  { %781 = vst.msk [vmem:[%s2229_s2 + $0x1a8] sm:$0xff] %vm728_vm0, %v593_v7  ;;  %749 = vst.msk [vmem:[%s2229_s2 + $0xa8] sm:$0xff] %vm728_vm0, %v561_v8 }
 0x176   :  { %v594_v9 = vpop.trf.xlu1  ;;  %v562_v10 = vpop.trf.xlu0 }
 0x177   :  { %783 = vst.msk [vmem:[%s2229_s2 + $0x1b8] sm:$0xff] %vm728_vm0, %v594_v9  ;;  %751 = vst.msk [vmem:[%s2229_s2 + $0xb8] sm:$0xff] %vm728_vm0, %v562_v10 }
 0x17a   :  { %v595_v14 = vpop.trf.xlu1  ;;  %v563_v15 = vpop.trf.xlu0 }
 0x17b   :  { %785 = vst.msk [vmem:[%s2229_s2 + $0x1c8] sm:$0xff] %vm728_vm0, %v595_v14  ;;  %753 = vst.msk [vmem:[%s2229_s2 + $0xc8] sm:$0xff] %vm728_vm0, %v563_v15 }
 0x17e   :  { %v596_v19 = vpop.trf.xlu1  ;;  %v564_v20 = vpop.trf.xlu0 }
 0x17f   :  { %787 = vst.msk [vmem:[%s2229_s2 + $0x1d8] sm:$0xff] %vm728_vm0, %v596_v19  ;;  %755 = vst.msk [vmem:[%s2229_s2 + $0xd8] sm:$0xff] %vm728_vm0, %v564_v20 }
 0x182   :  { %v597_v21 = vpop.trf.xlu1  ;;  %v565_v22 = vpop.trf.xlu0 }
 0x183   :  { %789 = vst.msk [vmem:[%s2229_s2 + $0x1e8] sm:$0xff] %vm728_vm0, %v597_v21  ;;  %757 = vst.msk [vmem:[%s2229_s2 + $0xe8] sm:$0xff] %vm728_vm0, %v565_v22 }
 0x186   :  { %v598_v23 = vpop.trf.xlu1  ;;  %v566_v24 = vpop.trf.xlu0 }
 0x187   :  { %791 = vst.msk [vmem:[%s2229_s2 + $0x1f8] sm:$0xff] %vm728_vm0, %v598_v23  ;;  %759 = vst.msk [vmem:[%s2229_s2 + $0xf8] sm:$0xff] %vm728_vm0, %v566_v24 }
 0x18a   :  { %v647_v25 = vpop.trf.xlu1  ;;  %v615_v26 = vpop.trf.xlu0 }
 0x18b   :  { %825 = vst.msk [vmem:[%s2229_s2 + $0x308] sm:$0xff] %vm728_vm0, %v647_v25  ;;  %793 = vst.msk [vmem:[%s2229_s2 + $0x208] sm:$0xff] %vm728_vm0, %v615_v26 }
 0x18e   :  { %v648_v27 = vpop.trf.xlu1  ;;  %v616_v28 = vpop.trf.xlu0 }
 0x18f   :  { %827 = vst.msk [vmem:[%s2229_s2 + $0x318] sm:$0xff] %vm728_vm0, %v648_v27  ;;  %795 = vst.msk [vmem:[%s2229_s2 + $0x218] sm:$0xff] %vm728_vm0, %v616_v28 }
 0x192   :  { %v649_v29 = vpop.trf.xlu1  ;;  %v617_v30 = vpop.trf.xlu0 }
 0x193   :  { %829 = vst.msk [vmem:[%s2229_s2 + $0x328] sm:$0xff] %vm728_vm0, %v649_v29  ;;  %797 = vst.msk [vmem:[%s2229_s2 + $0x228] sm:$0xff] %vm728_vm0, %v617_v30 }
 0x196   :  { %v650_v31 = vpop.trf.xlu1  ;;  %v618_v32 = vpop.trf.xlu0 }
 0x197   :  { %831 = vst.msk [vmem:[%s2229_s2 + $0x338] sm:$0xff] %vm728_vm0, %v650_v31  ;;  %799 = vst.msk [vmem:[%s2229_s2 + $0x238] sm:$0xff] %vm728_vm0, %v618_v32 }
 0x19a   :  { %v651_v33 = vpop.trf.xlu1  ;;  %v619_v34 = vpop.trf.xlu0 }
 0x19b   :  { %833 = vst.msk [vmem:[%s2229_s2 + $0x348] sm:$0xff] %vm728_vm0, %v651_v33  ;;  %801 = vst.msk [vmem:[%s2229_s2 + $0x248] sm:$0xff] %vm728_vm0, %v619_v34 }
 0x19e   :  { %v652_v35 = vpop.trf.xlu1  ;;  %v620_v36 = vpop.trf.xlu0 }
 0x19f   :  { %835 = vst.msk [vmem:[%s2229_s2 + $0x358] sm:$0xff] %vm728_vm0, %v652_v35  ;;  %803 = vst.msk [vmem:[%s2229_s2 + $0x258] sm:$0xff] %vm728_vm0, %v620_v36 }
 0x1a2   :  { %v653_v37 = vpop.trf.xlu1  ;;  %v621_v38 = vpop.trf.xlu0 }
 0x1a3   :  { %837 = vst.msk [vmem:[%s2229_s2 + $0x368] sm:$0xff] %vm728_vm0, %v653_v37  ;;  %805 = vst.msk [vmem:[%s2229_s2 + $0x268] sm:$0xff] %vm728_vm0, %v621_v38 }
 0x1a6   :  { %v654_v39 = vpop.trf.xlu1  ;;  %v622_v40 = vpop.trf.xlu0 }
 0x1a7   :  { %839 = vst.msk [vmem:[%s2229_s2 + $0x378] sm:$0xff] %vm728_vm0, %v654_v39  ;;  %807 = vst.msk [vmem:[%s2229_s2 + $0x278] sm:$0xff] %vm728_vm0, %v622_v40 }
 0x1aa   :  { %v655_v41 = vpop.trf.xlu1  ;;  %v623_v42 = vpop.trf.xlu0 }
 0x1ab   :  { %841 = vst.msk [vmem:[%s2229_s2 + $0x388] sm:$0xff] %vm728_vm0, %v655_v41  ;;  %809 = vst.msk [vmem:[%s2229_s2 + $0x288] sm:$0xff] %vm728_vm0, %v623_v42 }
 0x1ae   :  { %v656_v43 = vpop.trf.xlu1  ;;  %v624_v44 = vpop.trf.xlu0 }
 0x1af   :  { %843 = vst.msk [vmem:[%s2229_s2 + $0x398] sm:$0xff] %vm728_vm0, %v656_v43  ;;  %811 = vst.msk [vmem:[%s2229_s2 + $0x298] sm:$0xff] %vm728_vm0, %v624_v44 }
 0x1b2   :  { %v657_v45 = vpop.trf.xlu1  ;;  %v625_v46 = vpop.trf.xlu0 }
 0x1b3   :  { %845 = vst.msk [vmem:[%s2229_s2 + $0x3a8] sm:$0xff] %vm728_vm0, %v657_v45  ;;  %813 = vst.msk [vmem:[%s2229_s2 + $0x2a8] sm:$0xff] %vm728_vm0, %v625_v46 }
 0x1b6   :  { %v658_v47 = vpop.trf.xlu1  ;;  %v626_v48 = vpop.trf.xlu0 }
 0x1b7   :  { %847 = vst.msk [vmem:[%s2229_s2 + $0x3b8] sm:$0xff] %vm728_vm0, %v658_v47  ;;  %815 = vst.msk [vmem:[%s2229_s2 + $0x2b8] sm:$0xff] %vm728_vm0, %v626_v48 }
 0x1ba   :  { %v659_v49 = vpop.trf.xlu1  ;;  %v627_v50 = vpop.trf.xlu0 }
 0x1bb   :  { %849 = vst.msk [vmem:[%s2229_s2 + $0x3c8] sm:$0xff] %vm728_vm0, %v659_v49  ;;  %817 = vst.msk [vmem:[%s2229_s2 + $0x2c8] sm:$0xff] %vm728_vm0, %v627_v50 }
 0x1be   :  { %v660_v51 = vpop.trf.xlu1  ;;  %v628_v52 = vpop.trf.xlu0 }
 0x1bf   :  { %851 = vst.msk [vmem:[%s2229_s2 + $0x3d8] sm:$0xff] %vm728_vm0, %v660_v51  ;;  %819 = vst.msk [vmem:[%s2229_s2 + $0x2d8] sm:$0xff] %vm728_vm0, %v628_v52 }
 0x1c2   :  { %v661_v53 = vpop.trf.xlu1  ;;  %v629_v54 = vpop.trf.xlu0 }
 0x1c3   :  { %853 = vst.msk [vmem:[%s2229_s2 + $0x3e8] sm:$0xff] %vm728_vm0, %v661_v53  ;;  %821 = vst.msk [vmem:[%s2229_s2 + $0x2e8] sm:$0xff] %vm728_vm0, %v629_v54 }
 0x1c6   :  { %v662_v55 = vpop.trf.xlu1  ;;  %v630_v56 = vpop.trf.xlu0 }
 0x1c7   :  { %855 = vst.msk [vmem:[%s2229_s2 + $0x3f8] sm:$0xff] %vm728_vm0, %v662_v55  ;;  %823 = vst.msk [vmem:[%s2229_s2 + $0x2f8] sm:$0xff] %vm728_vm0, %v630_v56 }
 0x1ca   :  { %v711_v57 = vpop.trf.xlu1  ;;  %v679_v58 = vpop.trf.xlu0 }
 0x1cb   :  { %889 = vst.msk [vmem:[%s2229_s2 + $0x508] sm:$0xff] %vm728_vm0, %v711_v57  ;;  %857 = vst.msk [vmem:[%s2229_s2 + $0x408] sm:$0xff] %vm728_vm0, %v679_v58 }
 0x1ce   :  { %v712_v59 = vpop.trf.xlu1  ;;  %v680_v60 = vpop.trf.xlu0 }
 0x1cf   :  { %891 = vst.msk [vmem:[%s2229_s2 + $0x518] sm:$0xff] %vm728_vm0, %v712_v59  ;;  %859 = vst.msk [vmem:[%s2229_s2 + $0x418] sm:$0xff] %vm728_vm0, %v680_v60 }
 0x1d2   :  { %v713_v11 = vpop.trf.xlu1  ;;  %v681_v12 = vpop.trf.xlu0 }
 0x1d3   :  { %893 = vst.msk [vmem:[%s2229_s2 + $0x528] sm:$0xff] %vm728_vm0, %v713_v11  ;;  %861 = vst.msk [vmem:[%s2229_s2 + $0x428] sm:$0xff] %vm728_vm0, %v681_v12 }
 0x1d6   :  { %v714_v61 = vpop.trf.xlu1  ;;  %v682_v62 = vpop.trf.xlu0 }
 0x1d7   :  { %895 = vst.msk [vmem:[%s2229_s2 + $0x538] sm:$0xff] %vm728_vm0, %v714_v61  ;;  %863 = vst.msk [vmem:[%s2229_s2 + $0x438] sm:$0xff] %vm728_vm0, %v682_v62 }
 0x1da   :  { %v715_v63 = vpop.trf.xlu1  ;;  %v683_v0 = vpop.trf.xlu0 }
 0x1db   :  { %897 = vst.msk [vmem:[%s2229_s2 + $0x548] sm:$0xff] %vm728_vm0, %v715_v63  ;;  %865 = vst.msk [vmem:[%s2229_s2 + $0x448] sm:$0xff] %vm728_vm0, %v683_v0 }
 0x1de   :  { %v716_v1 = vpop.trf.xlu1  ;;  %v684_v2 = vpop.trf.xlu0 }
 0x1df   :  { %899 = vst.msk [vmem:[%s2229_s2 + $0x558] sm:$0xff] %vm728_vm0, %v716_v1  ;;  %867 = vst.msk [vmem:[%s2229_s2 + $0x458] sm:$0xff] %vm728_vm0, %v684_v2 }
 0x1e2   :  { %v717_v13 = vpop.trf.xlu1  ;;  %v685_v16 = vpop.trf.xlu0 }
 0x1e3   :  { %901 = vst.msk [vmem:[%s2229_s2 + $0x568] sm:$0xff] %vm728_vm0, %v717_v13  ;;  %869 = vst.msk [vmem:[%s2229_s2 + $0x468] sm:$0xff] %vm728_vm0, %v685_v16 }
 0x1e6   :  { %v718_v3 = vpop.trf.xlu1  ;;  %v686_v4 = vpop.trf.xlu0 }
 0x1e7   :  { %903 = vst.msk [vmem:[%s2229_s2 + $0x578] sm:$0xff] %vm728_vm0, %v718_v3  ;;  %871 = vst.msk [vmem:[%s2229_s2 + $0x478] sm:$0xff] %vm728_vm0, %v686_v4 }
 0x1ea   :  { %v719_v17 = vpop.trf.xlu1  ;;  %v687_v18 = vpop.trf.xlu0 }
 0x1eb   :  { %905 = vst.msk [vmem:[%s2229_s2 + $0x588] sm:$0xff] %vm728_vm0, %v719_v17  ;;  %873 = vst.msk [vmem:[%s2229_s2 + $0x488] sm:$0xff] %vm728_vm0, %v687_v18 }
 0x1ee   :  { %v720_v5 = vpop.trf.xlu1  ;;  %v688_v6 = vpop.trf.xlu0 }
 0x1ef   :  { %907 = vst.msk [vmem:[%s2229_s2 + $0x598] sm:$0xff] %vm728_vm0, %v720_v5  ;;  %875 = vst.msk [vmem:[%s2229_s2 + $0x498] sm:$0xff] %vm728_vm0, %v688_v6 }
 0x1f2   :  { %v721_v7 = vpop.trf.xlu1  ;;  %v689_v8 = vpop.trf.xlu0 }
 0x1f3   :  { %909 = vst.msk [vmem:[%s2229_s2 + $0x5a8] sm:$0xff] %vm728_vm0, %v721_v7  ;;  %877 = vst.msk [vmem:[%s2229_s2 + $0x4a8] sm:$0xff] %vm728_vm0, %v689_v8 }
 0x1f6   :  { %v722_v9 = vpop.trf.xlu1  ;;  %v690_v10 = vpop.trf.xlu0 }
 0x1f7   :  { %911 = vst.msk [vmem:[%s2229_s2 + $0x5b8] sm:$0xff] %vm728_vm0, %v722_v9  ;;  %879 = vst.msk [vmem:[%s2229_s2 + $0x4b8] sm:$0xff] %vm728_vm0, %v690_v10 }
 0x1fa   :  { %v723_v14 = vpop.trf.xlu1  ;;  %v691_v15 = vpop.trf.xlu0 }
 0x1fb   :  { %913 = vst.msk [vmem:[%s2229_s2 + $0x5c8] sm:$0xff] %vm728_vm0, %v723_v14  ;;  %881 = vst.msk [vmem:[%s2229_s2 + $0x4c8] sm:$0xff] %vm728_vm0, %v691_v15 }
 0x1fe   :  { %v724_v19 = vpop.trf.xlu1  ;;  %v692_v20 = vpop.trf.xlu0 }
 0x1ff   :  { %915 = vst.msk [vmem:[%s2229_s2 + $0x5d8] sm:$0xff] %vm728_vm0, %v724_v19  ;;  %883 = vst.msk [vmem:[%s2229_s2 + $0x4d8] sm:$0xff] %vm728_vm0, %v692_v20 }
 0x202   :  { %v725_v21 = vpop.trf.xlu1  ;;  %v693_v22 = vpop.trf.xlu0 }
 0x203   :  { %917 = vst.msk [vmem:[%s2229_s2 + $0x5e8] sm:$0xff] %vm728_vm0, %v725_v21  ;;  %885 = vst.msk [vmem:[%s2229_s2 + $0x4e8] sm:$0xff] %vm728_vm0, %v693_v22 }
 0x206   :  { %v726_v23 = vpop.trf.xlu1  ;;  %v694_v24 = vpop.trf.xlu0 }
 0x207   :  { %919 = vst.msk [vmem:[%s2229_s2 + $0x5f8] sm:$0xff] %vm728_vm0, %v726_v23  ;;  %887 = vst.msk [vmem:[%s2229_s2 + $0x4f8] sm:$0xff] %vm728_vm0, %v694_v24 }

</bundles_post_ra>
